<compile_context>
chip_gen: v6e
topology: v6e:2x2x1
jax: 0.10.0
libtpu: 0.0.40
codegen_flags: <defaults>
</compile_context>

<pallas_src>
import functools

import jax
import jax.numpy as jnp
from jax.experimental import pallas as pl
from jax.experimental.pallas import tpu as pltpu


_LANE = 128
_VMEM_LIMIT_BYTES = 48 * 1024 * 1024     # safe on v5e/v6e (128 MiB) and v7x (64 MiB/TC)
_FUSED_VMEM_BUDGET = 36 * 1024 * 1024    # fuse whole MLP only when it fits comfortably


def _round_up(x, m):
    return (x + m - 1) // m * m


def _divisor_tile(dim, target, step=_LANE):
    """Largest multiple of `step` <= target that divides `dim` (dim % step == 0)."""
    t = max((min(target, dim) // step) * step, step)
    while dim % t:
        t -= step
    return t


# ---------------------------------------------------------------------------
# Parameter preparation — done ONCE at setup, outside the forward path.
# Zero-pads every weight/bias up to lane multiples of 128 and casts weights to
# the MXU compute dtype (bf16 by default).  Biases stay f32 (epilogue add).
# ---------------------------------------------------------------------------
def prepare_mlp_params(weights, biases, compute_dtype=jnp.bfloat16):
    weights_p, biases_p = [], []
    for w, b in zip(weights, biases):
        K, N = w.shape
        Kp, Np = _round_up(K, _LANE), _round_up(N, _LANE)
        wp = jnp.pad(w, ((0, Kp - K), (0, Np - N))).astype(compute_dtype)
        bp = jnp.pad(b, ((0, Np - N),)).reshape(1, Np).astype(jnp.float32)
        weights_p.append(wp)
        biases_p.append(bp)
    return weights_p, biases_p


# ---------------------------------------------------------------------------
# Fused whole-MLP kernel: grid over M tiles only; all (padded) weights and
# biases are VMEM-resident (constant index_map); hidden activations stay in
# VMEM / vregs between layers (no HBM round-trip).
# ---------------------------------------------------------------------------
def _fused_mlp_kernel(x_ref, *refs, relu_flags):
    n = len(relu_flags)
    w_refs = refs[0:2 * n:2]
    b_refs = refs[1:2 * n:2]
    o_ref = refs[2 * n]

    h = x_ref[...].astype(w_refs[0].dtype)     # cast tile to MXU dtype in-kernel
    y = None
    for i in range(n):
        y = jnp.dot(h, w_refs[i][...], preferred_element_type=jnp.float32)
        y = y + b_refs[i][...]                 # bias in f32
        if relu_flags[i]:
            y = jnp.maximum(y, 0.0)            # nn.ReLU (hidden layers)
        if i + 1 < n:
            h = y.astype(w_refs[i + 1].dtype)  # keep activation in compute dtype
    o_ref[...] = y.astype(o_ref.dtype)


def _fused_vmem_bytes(weights_p, biases_p, x_dtype, out_dtype, tm):
    k0p = weights_p[0].shape[0]
    nlp = weights_p[-1].shape[1]
    total = 2 * tm * k0p * jnp.dtype(x_dtype).itemsize        # x block, 2 bufs
    total += 2 * tm * nlp * jnp.dtype(out_dtype).itemsize     # out block, 2 bufs
    for w, b in zip(weights_p, biases_p):
        total += 2 * w.size * jnp.dtype(w.dtype).itemsize     # resident weights
        total += 2 * b.size * jnp.dtype(b.dtype).itemsize
    widest = max(w.shape[1] for w in weights_p)
    cbytes = jnp.dtype(weights_p[0].dtype).itemsize
    total += 2 * tm * widest * (4 + cbytes)                   # live activations (f32 + compute)
    return total


def _fused_mlp_forward(x2d, weights_p, biases_p, relu_flags, out_dtype, tm):
    M, K0p = x2d.shape
    Np_last = weights_p[-1].shape[1]

    in_specs = [pl.BlockSpec((tm, K0p), lambda m: (m, 0))]
    inputs = [x2d]
    for w, b in zip(weights_p, biases_p):
        Kp, Np = w.shape
        in_specs.append(pl.BlockSpec((Kp, Np), lambda m: (0, 0)))   # weight resident
        in_specs.append(pl.BlockSpec((1, Np), lambda m: (0, 0)))    # bias resident
        inputs.extend([w, b])

    return pl.pallas_call(
        functools.partial(_fused_mlp_kernel, relu_flags=tuple(relu_flags)),
        out_shape=jax.ShapeDtypeStruct((M, Np_last), out_dtype),
        grid_spec=pltpu.PrefetchScalarGridSpec(
            num_scalar_prefetch=0,
            grid=(pl.cdiv(M, tm),),
            in_specs=in_specs,
            out_specs=pl.BlockSpec((tm, Np_last), lambda m: (m, 0)),
        ),
        compiler_params=pltpu.CompilerParams(
            dimension_semantics=("parallel",),
            vmem_limit_bytes=_VMEM_LIMIT_BYTES,
        ),
    )(*inputs)


# ---------------------------------------------------------------------------
# Per-layer tiled fallback (large layers that do not fit the fused budget).
# ---------------------------------------------------------------------------
def _fc_kernel(x_ref, w_ref, b_ref, o_ref, acc_ref, *, apply_relu):
    k = pl.program_id(2)

    @pl.when(k == 0)
    def _():
        # Initialize the accumulator with the bias: saves a separate zero
        # materialization and the epilogue bias add.
        acc_ref[...] = jnp.broadcast_to(b_ref[...], acc_ref.shape)

    acc_ref[...] += jnp.dot(
        x_ref[...].astype(w_ref.dtype), w_ref[...],
        preferred_element_type=jnp.float32,
    )

    @pl.when(k == pl.num_programs(2) - 1)
    def _():
        y = acc_ref[...]
        if apply_relu:
            y = jnp.maximum(y, 0.0)
        o_ref[...] = y.astype(o_ref.dtype)


def _fc_tiles(M, Kp, Np):
    tm = min(512, _round_up(M, 16))
    # Full-width N resident when modest: x then streams from HBM exactly once.
    tn = Np if Np <= 2048 else _divisor_tile(Np, 512)
    tk = Kp if Kp <= 1024 else _divisor_tile(Kp, 1024)
    return tm, tn, tk


def _fc_forward(x2d, w_p, b_p, *, apply_relu, out_dtype):
    M, K = x2d.shape
    Kp, Np = w_p.shape
    assert K == Kp, "input K must match the (pre-padded) weight K"
    tm, tn, tk = _fc_tiles(M, Kp, Np)
    grid = (pl.cdiv(M, tm), Np // tn, Kp // tk)

    return pl.pallas_call(
        functools.partial(_fc_kernel, apply_relu=apply_relu),
        out_shape=jax.ShapeDtypeStruct((M, Np), out_dtype),
        grid_spec=pltpu.PrefetchScalarGridSpec(
            num_scalar_prefetch=0,
            grid=grid,
            in_specs=[
                pl.BlockSpec((tm, tk), lambda i, j, k: (i, k)),   # x tile
                pl.BlockSpec((tk, tn), lambda i, j, k: (k, j)),   # weight tile
                pl.BlockSpec((1, tn), lambda i, j, k: (0, j)),    # bias tile
            ],
            out_specs=pl.BlockSpec((tm, tn), lambda i, j, k: (i, j)),
            scratch_shapes=[pltpu.VMEM((tm, tn), jnp.float32)],
        ),
        compiler_params=pltpu.CompilerParams(
            dimension_semantics=("parallel", "parallel", "arbitrary"),
            vmem_limit_bytes=_VMEM_LIMIT_BYTES,
        ),
    )(x2d, w_p, b_p)


# ---------------------------------------------------------------------------
# MLPModule.forward
# ---------------------------------------------------------------------------
def mlp_forward(x, weights_p, biases_p, *, relu_flags, out_features,
                tm=256, force_per_layer=False):
    """weights_p / biases_p come from prepare_mlp_params (padded + cast once)."""
    orig_shape = x.shape
    final_dtype = x.dtype
    K = orig_shape[-1]
    x2d = x.reshape(-1, K)
    M = x2d.shape[0]

    # Only the K tail of the first input must be zero-padded (garbage K columns
    # would pollute every output row); M is NOT padded (partial M tiles are
    # masked on write by Pallas).
    K0p = weights_p[0].shape[0]
    if K0p != K:
        x2d = jnp.pad(x2d, ((0, 0), (0, K0p - K)))

    tm_eff = min(tm, _round_up(M, 16))
    fits = _fused_vmem_bytes(weights_p, biases_p, x2d.dtype, final_dtype,
                             tm_eff) <= _FUSED_VMEM_BUDGET

    if fits and not force_per_layer:
        out = _fused_mlp_forward(x2d, weights_p, biases_p, relu_flags,
                                 final_dtype, tm_eff)
    else:
        h = x2d
        n = len(weights_p)
        for i, (w_p, b_p) in enumerate(zip(weights_p, biases_p)):
            last = i == n - 1
            # bf16 inter-layer activations halve HBM traffic between layers.
            layer_out_dtype = final_dtype if last else w_p.dtype
            h = _fc_forward(h, w_p, b_p, apply_relu=relu_flags[i],
                            out_dtype=layer_out_dtype)
        out = h

    out = out[:, :out_features]
    return out.reshape(*orig_shape[:-1], out_features)


if __name__ == "__main__":
    # MLPModule(in_features=32, hidden_features=[64], out_features=16,
    #           dropout=0.0, act=None (ReLU), decision_output=True)
    # -> FC(32->64, ReLU) then FC(64->16, no activation).
    batch, seq = 2, 8
    in_features, hidden, out_features = 32, 64, 16

    key = jax.random.PRNGKey(0)
    kx, kw1, kb1, kw2, kb2 = jax.random.split(key, 5)

    x = jax.random.normal(kx, (batch, seq, in_features), dtype=jnp.float32)

    # PyTorch nn.Linear-style uniform init (bound = 1/sqrt(fan_in)); PyTorch
    # stores weight as (out, in) and computes x @ W^T — we store (in, out).
    bound1 = 1.0 / (in_features ** 0.5)
    w1 = jax.random.uniform(kw1, (in_features, hidden),
                            minval=-bound1, maxval=bound1, dtype=jnp.float32)
    b1 = jax.random.uniform(kb1, (hidden,),
                            minval=-bound1, maxval=bound1, dtype=jnp.float32)
    bound2 = 1.0 / (hidden ** 0.5)
    w2 = jax.random.uniform(kw2, (hidden, out_features),
                            minval=-bound2, maxval=bound2, dtype=jnp.float32)
    b2 = jax.random.uniform(kb2, (out_features,),
                            minval=-bound2, maxval=bound2, dtype=jnp.float32)

    weights, biases = [w1, w2], [b1, b2]
    relu_flags = (True, False)   # hidden layer: ReLU; decision output: Identity

    # Plain-JAX f32 reference.
    h_ref = jnp.maximum(jnp.einsum("bsk,kn->bsn", x, w1) + b1, 0.0)
    ref = jnp.einsum("bsk,kn->bsn", h_ref, w2) + b2

    def run(compute_dtype, force_per_layer):
        wp, bp = prepare_mlp_params(weights, biases, compute_dtype=compute_dtype)
        fn = jax.jit(functools.partial(
            mlp_forward, relu_flags=relu_flags, out_features=out_features,
            force_per_layer=force_per_layer))
        return jax.block_until_ready(fn(x, wp, bp))

    # 1) f32 compute, fused whole-MLP kernel — exact path, tight tolerance.
    out = run(jnp.float32, force_per_layer=False)
    assert out.shape == (batch, seq, out_features)
    assert jnp.allclose(out, ref, atol=1e-5, rtol=1e-5)

    # 2) f32 compute, per-layer tiled kernels — tight tolerance.
    out = run(jnp.float32, force_per_layer=True)
    assert jnp.allclose(out, ref, atol=1e-5, rtol=1e-5)

    # 3) bf16 MXU compute (fast path), fused — looser tolerance by design.
    out = run(jnp.bfloat16, force_per_layer=False)
    assert jnp.allclose(out, ref, atol=5e-2, rtol=5e-2)

    # 4) bf16 MXU compute, per-layer tiled kernels.
    out = run(jnp.bfloat16, force_per_layer=True)
    assert jnp.allclose(out, ref, atol=5e-2, rtol=5e-2)

    print("KERNEL_OK")
</pallas_src>

<mosaic_0001>
module attributes {stable_mosaic.version = 11 : i64} {
  func.func @_fused_mlp_kernel(%arg0: i32, %arg1: memref<16x128xf32, #tpu.memory_space<vmem>>, %arg2: memref<128x128xf32, #tpu.memory_space<vmem>>, %arg3: memref<1x128xf32, #tpu.memory_space<vmem>>, %arg4: memref<128x128xf32, #tpu.memory_space<vmem>>, %arg5: memref<1x128xf32, #tpu.memory_space<vmem>>, %arg6: memref<16x128xf32, #tpu.memory_space<vmem>>) attributes {dimension_semantics = [#tpu.dimension_semantics<parallel>], iteration_bounds = array<i64: 1>, scalar_prefetch = 0 : i64, scratch_operands = 0 : i64, tpu.core_type = #tpu.core_type<tc>, window_params = [{transform_indices = @transform_0, window_bounds = array<i64: 16, 128>}, {pipeline_mode = #tpu.pipeline_mode<synchronous>, transform_indices = @transform_1, window_bounds = array<i64: 128, 128>}, {pipeline_mode = #tpu.pipeline_mode<synchronous>, transform_indices = @transform_2, window_bounds = array<i64: 1, 128>}, {pipeline_mode = #tpu.pipeline_mode<synchronous>, transform_indices = @transform_3, window_bounds = array<i64: 128, 128>}, {pipeline_mode = #tpu.pipeline_mode<synchronous>, transform_indices = @transform_4, window_bounds = array<i64: 1, 128>}, {transform_indices = @transform_5, window_bounds = array<i64: 16, 128>}]} {
    %c0 = arith.constant 0 : index
    %c0_0 = arith.constant 0 : index
    %0 = vector.load %arg1[%c0, %c0_0] : memref<16x128xf32, #tpu.memory_space<vmem>>, vector<16x128xf32>
    %c0_1 = arith.constant 0 : index
    %c0_2 = arith.constant 0 : index
    %1 = vector.load %arg2[%c0_1, %c0_2] : memref<128x128xf32, #tpu.memory_space<vmem>>, vector<128x128xf32>
    %cst = arith.constant dense<0.000000e+00> : vector<16x128xf32>
    %2 = tpu.matmul %0, %1, %cst {dimension_numbers = #tpu.dot_dimension_numbers<[1], [0], [0], [1], [0, 0, 1, 1], [], []>} : vector<16x128xf32>, vector<128x128xf32>, vector<16x128xf32> -> vector<16x128xf32>
    %c0_3 = arith.constant 0 : index
    %c0_4 = arith.constant 0 : index
    %3 = vector.load %arg3[%c0_3, %c0_4] : memref<1x128xf32, #tpu.memory_space<vmem>>, vector<1x128xf32>
    %4 = vector.broadcast %3 : vector<1x128xf32> to vector<16x128xf32>
    %5 = arith.addf %2, %4 : vector<16x128xf32>
    %cst_5 = arith.constant 0.000000e+00 : f32
    %6 = vector.broadcast %cst_5 : f32 to vector<16x128xf32>
    %7 = arith.maximumf %5, %6 : vector<16x128xf32>
    %c0_6 = arith.constant 0 : index
    %c0_7 = arith.constant 0 : index
    %8 = vector.load %arg4[%c0_6, %c0_7] : memref<128x128xf32, #tpu.memory_space<vmem>>, vector<128x128xf32>
    %cst_8 = arith.constant dense<0.000000e+00> : vector<16x128xf32>
    %9 = tpu.matmul %7, %8, %cst_8 {dimension_numbers = #tpu.dot_dimension_numbers<[1], [0], [0], [1], [0, 0, 1, 1], [], []>} : vector<16x128xf32>, vector<128x128xf32>, vector<16x128xf32> -> vector<16x128xf32>
    %c0_9 = arith.constant 0 : index
    %c0_10 = arith.constant 0 : index
    %10 = vector.load %arg5[%c0_9, %c0_10] : memref<1x128xf32, #tpu.memory_space<vmem>>, vector<1x128xf32>
    %11 = vector.broadcast %10 : vector<1x128xf32> to vector<16x128xf32>
    %12 = arith.addf %9, %11 : vector<16x128xf32>
    %c0_11 = arith.constant 0 : index
    %c0_12 = arith.constant 0 : index
    %13 = vector.load %arg6[%c0_11, %c0_12] : memref<16x128xf32, #tpu.memory_space<vmem>>, vector<16x128xf32>
    tpu.vector_store %arg6[%c0_11, %c0_12], %12 {strides = array<i32>} : memref<16x128xf32, #tpu.memory_space<vmem>>, vector<16x128xf32>,
    return
  }
  func.func @transform_0(%arg0: i32) -> (i32, i32) {
    %c0_i32 = arith.constant 0 : i32
    %c0_i32_0 = arith.constant 0 : i32
    return %arg0, %c0_i32 : i32, i32
  }
  func.func @transform_1(%arg0: i32) -> (i32, i32) {
    %c0_i32 = arith.constant 0 : i32
    %c0_i32_0 = arith.constant 0 : i32
    %c0_i32_1 = arith.constant 0 : i32
    return %c0_i32, %c0_i32_0 : i32, i32
  }
  func.func @transform_2(%arg0: i32) -> (i32, i32) {
    %c0_i32 = arith.constant 0 : i32
    %c0_i32_0 = arith.constant 0 : i32
    %c0_i32_1 = arith.constant 0 : i32
    return %c0_i32, %c0_i32_0 : i32, i32
  }
  func.func @transform_3(%arg0: i32) -> (i32, i32) {
    %c0_i32 = arith.constant 0 : i32
    %c0_i32_0 = arith.constant 0 : i32
    %c0_i32_1 = arith.constant 0 : i32
    return %c0_i32, %c0_i32_0 : i32, i32
  }
  func.func @transform_4(%arg0: i32) -> (i32, i32) {
    %c0_i32 = arith.constant 0 : i32
    %c0_i32_0 = arith.constant 0 : i32
    %c0_i32_1 = arith.constant 0 : i32
    return %c0_i32, %c0_i32_0 : i32, i32
  }
  func.func @transform_5(%arg0: i32) -> (i32, i32) {
    %c0_i32 = arith.constant 0 : i32
    %c0_i32_0 = arith.constant 0 : i32
    return %arg0, %c0_i32 : i32, i32
  }
}

</mosaic_0001>

<bundles_post_ra>
// kernel: mlp_forward.1
= control target key start
LH: loop header
LB: loop body
LE: loop exit
PB: predicated region body
PF: predicated region fallthrough
CT: control target
= control target key end

     0   :  { %10 = vsyncpa [#allocation3], 0  ;;  %s470_s0 = inlined_call_operand.vmem [shape: f32[16,128], index: 0, kind: input, shape index: {}]   ;;  %s471_s1 = inlined_call_operand.hbm [shape: f32[128,128], index: 1, kind: input, shape index: {}]   ;;  %s472_s2 = inlined_call_operand.vmem [shape: f32[1,128], index: 2, kind: input, shape index: {}]   ;;  %s473_s3 = inlined_call_operand.hbm [shape: f32[128,128], index: 3, kind: input, shape index: {}]   ;;  %s474_s4 = inlined_call_operand.vmem [shape: f32[1,128], index: 4, kind: input, shape index: {}]   ;;  %s475_s5 = inlined_call_operand.vmem [shape: f32[16,128], index: 5, kind: output, shape index: {}]  }
   0x1   :  { %11 = vsyncpa [#allocation5], 0  ;;  %s412_s18 = smov [#allocation2]  }
   0x2   :  { %s19_s19 = sshll.u32 %s412_s18, 4  ;;  %s20_s19 = int_to_ptr.vmem [resolvable:$true] %s19_s19 }
   0x3   :  { %s376_s20 = scalar_lea.vmem %s20_s19, 2048  ;;  %p381_p1 = scmp.lt.s32.totalorder %s20_s19, %s20_s19 }
   0x4   :  { %p377_p0 = scmp.ne.s32.totalorder %s20_s19, %s376_s20  ;;  %p382_p2 = scmp.lt.s32.totalorder %s376_s20, %s376_s20 }
   0x6   :  { %p383_p3 = por %p382_p2, %p381_p1 }
   0x8   :  { %p384_p4 = pnand %p383_p3, %p377_p0 }
   0xa   :  { %387 = shalt.err (!%p384_p4)
}
   0xb   :  { %s413_s21 = smov 128   ;;  %s414_s22 = smov 8  }
   0xc   :  { %25 = dma.hbm_to_vmem [thread:$0]  %s471_s1, 2048, %s20_s19, [#allocation3], %s413_s21, %s413_s21, %s414_s22  }
   0xd   :  { %s415_s25 = smov [#allocation4]  }
   0xe   :  { %s33_s26 = sshll.u32 %s415_s25, 4  ;;  %s34_s26 = int_to_ptr.vmem [resolvable:$true] %s33_s26 }
   0xf   :  { %s396_s27 = scalar_lea.vmem %s34_s26, 2048  ;;  %p401_p6 = scmp.lt.s32.totalorder %s34_s26, %s34_s26 }
  0x10   :  { %p397_p5 = scmp.ne.s32.totalorder %s34_s26, %s396_s27  ;;  %p402_p7 = scmp.lt.s32.totalorder %s396_s27, %s396_s27 }
  0x12   :  { %p403_p8 = por %p402_p7, %p401_p6 }
  0x14   :  { %p404_p9 = pnand %p403_p8, %p397_p5 }
  0x16   :  { %407 = shalt.err (!%p404_p9)
}
  0x17   :  { %39 = dma.hbm_to_vmem [thread:$0]  %s473_s3, 2048, %s34_s26, [#allocation5], %s413_s21, %s413_s21, %s414_s22  }
  0x18   :  { %408 = dma.done.wait [#allocation3], 2048  }
  0x19   :  { %409 = vsyncadd [#allocation3], 4294965248 }
  0x1a   :  { %410 = dma.done.wait [#allocation5], 2048  }
  0x1b   :  { %411 = vsyncadd [#allocation5], 4294965248  ;;  %v65_v0 = vld [vmem:[#allocation2 + $0x78] sm:$0xff]  ;;  %v64_v1 = vld [vmem:[#allocation2 + $0x70] sm:$0xff] }
  0x1c   :  { %294 = vmatprep.subr.mxu0 %v65_v0  ;;  %v63_v2 = vld [vmem:[#allocation2 + $0x68] sm:$0xff]  ;;  %v62_v3 = vld [vmem:[#allocation2 + $0x60] sm:$0xff]  ;;  %v61_v5 = vld [vmem:[#allocation2 + $0x58] sm:$0xff] }
  0x1d   :  { %295 = vmatpush3.msra.mxu0 %v65_v0  ;;  %v48_v4 = vld [vmem:[%s470_s0] sm:$0xff]  ;;  %v165_v6 = vld [vmem:[#allocation4 + $0x78] sm:$0xff]  ;;  %v164_v7 = vld [vmem:[#allocation4 + $0x70] sm:$0xff] }
  0x1e   :  { %296 = vmatprep.subr.mxu0 %v64_v1  ;;  %326 = vmatprep.mubr.f32.mxu0 %v48_v4  ;;  %v60_v8 = vld [vmem:[#allocation2 + $0x50] sm:$0xff]  ;;  %v163_v9 = vld [vmem:[#allocation4 + $0x68] sm:$0xff]  ;;  %v162_v11 = vld [vmem:[#allocation4 + $0x60] sm:$0xff] }
  0x1f   :  { %297 = vmatpush3.msra.mxu0 %v64_v1  ;;  %329 = vmatprep.subr.mxu1 %v165_v6  ;;  %v59_v10 = vld [vmem:[#allocation2 + $0x48] sm:$0xff]  ;;  %v58_v12 = vld [vmem:[#allocation2 + $0x40] sm:$0xff]  ;;  %v161_v13 = vld [vmem:[#allocation4 + $0x58] sm:$0xff] }
  0x20   :  { %298 = vmatprep.subr.mxu0 %v63_v2  ;;  %330 = vmatpush3.msra.mxu1 %v165_v6  ;;  %v57_v14 = vld [vmem:[#allocation2 + $0x38] sm:$0xff]  ;;  %v160_v15 = vld [vmem:[#allocation4 + $0x50] sm:$0xff]  ;;  %v159_v17 = vld [vmem:[#allocation4 + $0x48] sm:$0xff] }
  0x21   :  { %299 = vmatpush3.msra.mxu0 %v63_v2  ;;  %331 = vmatprep.subr.mxu1 %v164_v7  ;;  %v56_v16 = vld [vmem:[#allocation2 + $0x30] sm:$0xff]  ;;  %v55_v18 = vld [vmem:[#allocation2 + $0x28] sm:$0xff]  ;;  %v158_v19 = vld [vmem:[#allocation4 + $0x40] sm:$0xff] }
  0x22   :  { %300 = vmatprep.subr.mxu0 %v62_v3  ;;  %332 = vmatpush3.msra.mxu1 %v164_v7  ;;  %v54_v20 = vld [vmem:[#allocation2 + $0x20] sm:$0xff]  ;;  %v157_v21 = vld [vmem:[#allocation4 + $0x38] sm:$0xff]  ;;  %v156_v23 = vld [vmem:[#allocation4 + $0x30] sm:$0xff] }
  0x23   :  { %301 = vmatpush3.msra.mxu0 %v62_v3  ;;  %333 = vmatprep.subr.mxu1 %v163_v9  ;;  %v53_v22 = vld [vmem:[#allocation2 + $0x18] sm:$0xff]  ;;  %v52_v24 = vld [vmem:[#allocation2 + $0x10] sm:$0xff]  ;;  %v155_v25 = vld [vmem:[#allocation4 + $0x28] sm:$0xff] }
  0x24   :  { %302 = vmatprep.subr.mxu0 %v61_v5  ;;  %334 = vmatpush3.msra.mxu1 %v163_v9  ;;  %v51_v26 = vld [vmem:[#allocation2 + $0x8] sm:$0xff]  ;;  %v154_v27 = vld [vmem:[#allocation4 + $0x20] sm:$0xff]  ;;  %v153_v30 = vld [vmem:[#allocation4 + $0x18] sm:$0xff] }
  0x25   :  { %303 = vmatpush3.msra.mxu0 %v61_v5  ;;  %335 = vmatprep.subr.mxu1 %v162_v11  ;;  %v50_v28 = vld [vmem:[#allocation2] sm:$0xff]  ;;  %v49_v29 = vld [vmem:[%s470_s0 + $0x8] sm:$0xff]  ;;  %v152_v31 = vld [vmem:[#allocation4 + $0x10] sm:$0xff] }
  0x26   :  { %304 = vmatprep.subr.mxu0 %v60_v8  ;;  %336 = vmatpush3.msra.mxu1 %v162_v11  ;;  %v151_v32 = vld [vmem:[#allocation4 + $0x8] sm:$0xff]  ;;  %v150_v33 = vld [vmem:[#allocation4] sm:$0xff] }
  0x27   :  { %305 = vmatpush3.msra.mxu0 %v60_v8  ;;  %337 = vmatprep.subr.mxu1 %v161_v13  ;;  %v256_v34 = vld [vmem:[%s472_s2] ss:$0 sm:$0xff] }
  0x28   :  { %306 = vmatprep.subr.mxu0 %v59_v10  ;;  %338 = vmatpush3.msra.mxu1 %v161_v13  ;;  %v257_v41 = vld [vmem:[%s474_s4] ss:$0 sm:$0xff] }
  0x29   :  { %307 = vmatpush3.msra.mxu0 %v59_v10  ;;  %339 = vmatprep.subr.mxu1 %v160_v15 }
  0x2a   :  { %308 = vmatprep.subr.mxu0 %v58_v12  ;;  %340 = vmatpush3.msra.mxu1 %v160_v15 }
  0x2b   :  { %309 = vmatpush3.msra.mxu0 %v58_v12  ;;  %341 = vmatprep.subr.mxu1 %v159_v17 }
  0x2c   :  { %310 = vmatprep.subr.mxu0 %v57_v14  ;;  %342 = vmatpush3.msra.mxu1 %v159_v17 }
  0x2d   :  { %311 = vmatpush3.msra.mxu0 %v57_v14  ;;  %343 = vmatprep.subr.mxu1 %v158_v19 }
  0x2e   :  { %312 = vmatprep.subr.mxu0 %v56_v16  ;;  %344 = vmatpush3.msra.mxu1 %v158_v19 }
  0x2f   :  { %313 = vmatpush3.msra.mxu0 %v56_v16  ;;  %345 = vmatprep.subr.mxu1 %v157_v21 }
  0x30   :  { %314 = vmatprep.subr.mxu0 %v55_v18  ;;  %346 = vmatpush3.msra.mxu1 %v157_v21 }
  0x31   :  { %315 = vmatpush3.msra.mxu0 %v55_v18  ;;  %347 = vmatprep.subr.mxu1 %v156_v23 }
  0x32   :  { %316 = vmatprep.subr.mxu0 %v54_v20  ;;  %348 = vmatpush3.msra.mxu1 %v156_v23 }
  0x33   :  { %317 = vmatpush3.msra.mxu0 %v54_v20  ;;  %349 = vmatprep.subr.mxu1 %v155_v25 }
  0x34   :  { %318 = vmatprep.subr.mxu0 %v53_v22  ;;  %350 = vmatpush3.msra.mxu1 %v155_v25 }
  0x35   :  { %319 = vmatpush3.msra.mxu0 %v53_v22  ;;  %351 = vmatprep.subr.mxu1 %v154_v27 }
  0x36   :  { %320 = vmatprep.subr.mxu0 %v52_v24  ;;  %352 = vmatpush3.msra.mxu1 %v154_v27 }
  0x37   :  { %321 = vmatpush3.msra.mxu0 %v52_v24  ;;  %353 = vmatprep.subr.mxu1 %v153_v30 }
  0x38   :  { %322 = vmatprep.subr.mxu0 %v51_v26  ;;  %354 = vmatpush3.msra.mxu1 %v153_v30 }
  0x39   :  { %323 = vmatpush3.msra.mxu0 %v51_v26  ;;  %355 = vmatprep.subr.mxu1 %v152_v31 }
  0x3a   :  { %324 = vmatprep.subr.mxu0 %v50_v28  ;;  %356 = vmatpush3.msra.mxu1 %v152_v31 }
  0x3b   :  { %325 = vmatpush3.msra.mxu0 %v50_v28  ;;  %357 = vmatprep.subr.mxu1 %v151_v32 }
  0x3c   :  { %327 = vmatmul.mubr.f32.vlgmr.msra.gmra.mxu0 %v49_v29  ;;  %358 = vmatpush3.msra.mxu1 %v151_v32 }
  0x3d   :  { %359 = vmatprep.subr.mxu1 %v150_v33 }
  0x3e   :  { %360 = vmatpush3.msra.mxu1 %v150_v33 }
  0xfc   :  { %v328_v35 = vpop.f32.mrf.mxu0 }
  0xfd   :  { %v145_v36 = vadd.f32 %v328_v35, %v256_v34 }
  0xfe   :  { %v139_v37 = vpop.f32.mrf.mxu0 }
  0xff   :  { %v140_v38 = vadd.f32 %v256_v34, %v139_v37  ;;  %v149_v40 = vmax.f32 %v145_v36, 0.0 }
 0x101   :  { %v148_v39 = vmax.f32 %v140_v38, 0.0 }
 0x103   :  { %361 = vmatprep.mubr.f32.mxu1 %v148_v39 }
 0x104   :  { %362 = vmatmul.mubr.f32.vlgmr.msra.gmra.mxu1 %v149_v40 }
 0x1c4   :  { %v363_v42 = vpop.f32.mrf.mxu1 }
 0x1c5   :  { %v245_v43 = vadd.f32 %v363_v42, %v257_v41 }
 0x1c6   :  { %v239_v44 = vpop.f32.mrf.mxu1 }
 0x1c7   :  { %249 = vst [vmem:[%s475_s5 + $0x8] sm:$0xff] %v245_v43  ;;  %v240_v45 = vadd.f32 %v257_v41, %v239_v44 }
 0x1c9   :  { %248 = vst [vmem:[%s475_s5] sm:$0xff] %v240_v45 }
 0x1ca   :  { %254 = vsyncpa [#allocation3], 1 }
 0x1cb   :  { %255 = vsyncpa [#allocation5], 1 }

</bundles_post_ra>
